<compile_context>
chip_gen: v6e
topology: v6e:2x2x1
jax: 0.10.0
libtpu: 0.0.40
codegen_flags: <defaults>
</compile_context>

<pallas_src>
import functools

import jax
import jax.numpy as jnp
from jax.experimental import pallas as pl
from jax.experimental.pallas import tpu as pltpu

# Used only by the pure-JAX reference (ground truth); the kernel uses default precision.
HIGH = jax.lax.Precision.HIGHEST


def lmd_kernel(tgt_ref, mem_ref,
               wq_ref, wk_ref, wv_ref, bq_ref, bk_ref, bv_ref,
               wo_ref, bo_ref,
               w1_ref, b1_ref, w2_ref, b2_ref,
               g2_ref, be2_ref, g3_ref, be3_ref,
               out_ref, attn_ref=None,
               *, nhead, eps, n_batch, tgt_len, src_len):
    """Whole batch in one invocation.

    tgt_ref: (N*L, E) rows ordered batch-major; mem_ref: (N*S, E).
    Computes:
      tgt2, attn_w = MultiheadAttention(tgt, memory, memory)   (cross-attention)
      x  = LayerNorm2(tgt + tgt2)
      y  = LayerNorm3(x + Linear2(relu(Linear1(x))))
    """
    E = tgt_ref.shape[-1]
    D = E // nhead
    scale = 1.0 / float(D) ** 0.5

    tgt = tgt_ref[...]                     # (N*L, E) f32
    mem = mem_ref[...]                     # (N*S, E) f32

    # --- q/k/v projections on the flattened batch (default MXU precision) ---
    q = jnp.dot(tgt, wq_ref[...], preferred_element_type=jnp.float32) + bq_ref[...]
    k = jnp.dot(mem, wk_ref[...], preferred_element_type=jnp.float32) + bk_ref[...]
    v = jnp.dot(mem, wv_ref[...], preferred_element_type=jnp.float32) + bv_ref[...]
    q = q * scale

    q3 = q.reshape(n_batch, tgt_len, E)    # free: splits sublane dim, lane dim unchanged
    k3 = k.reshape(n_batch, src_len, E)
    v3 = v.reshape(n_batch, src_len, E)

    # --- gather heads into a single leading batch dim: (H*N, L, D) / (H*N, S, D) ---
    qb = jnp.concatenate([q3[:, :, h * D:(h + 1) * D] for h in range(nhead)], axis=0)
    kb = jnp.concatenate([k3[:, :, h * D:(h + 1) * D] for h in range(nhead)], axis=0)
    vb = jnp.concatenate([v3[:, :, h * D:(h + 1) * D] for h in range(nhead)], axis=0)

    # --- one batched score matmul + softmax (EUP exp / approx reciprocal) ---
    s = jnp.einsum('bld,bsd->bls', qb, kb,
                   preferred_element_type=jnp.float32)            # (H*N, L, S)
    s = s - jnp.max(s, axis=-1, keepdims=True)
    p = jnp.exp(s)
    a = p * pl.reciprocal(jnp.sum(p, axis=-1, keepdims=True), approx=True)

    if attn_ref is not None:
        # PyTorch default average_attn_weights=True -> mean over heads, (N, L, S).
        a4 = a.reshape(nhead, n_batch, tgt_len, src_len)
        attn_sum = a4[0]
        for h in range(1, nhead):
            attn_sum = attn_sum + a4[h]
        attn_ref[...] = (attn_sum * (1.0 / nhead)).astype(attn_ref.dtype)

    # --- one batched context matmul, then restore (N*L, E) layout ---
    ctx = jnp.einsum('bls,bsd->bld', a, vb,
                     preferred_element_type=jnp.float32)          # (H*N, L, D)
    ctx4 = ctx.reshape(nhead, n_batch, tgt_len, D)
    ctx_cat = jnp.concatenate([ctx4[h] for h in range(nhead)], axis=-1)  # (N, L, E)
    ctx2 = ctx_cat.reshape(n_batch * tgt_len, E)

    # --- output projection + residual + LayerNorm2 (dropout2 = identity) ---
    attn_out = jnp.dot(ctx2, wo_ref[...], preferred_element_type=jnp.float32) + bo_ref[...]
    x = tgt + attn_out
    mu = jnp.mean(x, axis=-1, keepdims=True)
    xc = x - mu
    var = jnp.mean(xc * xc, axis=-1, keepdims=True)
    x = xc * jax.lax.rsqrt(var + eps) * g2_ref[...] + be2_ref[...]

    # --- feed-forward: linear1 -> relu -> linear2 (dropout = identity) ---
    h1 = jnp.dot(x, w1_ref[...], preferred_element_type=jnp.float32) + b1_ref[...]
    h1 = jnp.maximum(h1, 0.0)
    ff = jnp.dot(h1, w2_ref[...], preferred_element_type=jnp.float32) + b2_ref[...]

    # --- residual + LayerNorm3 (dropout3 = identity) ---
    y = x + ff
    mu = jnp.mean(y, axis=-1, keepdims=True)
    yc = y - mu
    var = jnp.mean(yc * yc, axis=-1, keepdims=True)
    y = yc * jax.lax.rsqrt(var + eps) * g3_ref[...] + be3_ref[...]

    out_ref[...] = y.astype(out_ref.dtype)


def lmd_layer_pallas(tgt, memory, params, *, nhead, eps=1e-5, return_attn=True):
    """tgt: (L, N, E), memory: (S, N, E)  ->  (out:(L, N, E), attn:(N, L, S) or None)."""
    L, N, E = tgt.shape
    S = memory.shape[0]
    assert E % nhead == 0, f"d_model={E} must be divisible by nhead={nhead}"

    # Batch-major, flattened row dim.  XLA fuses transpose+reshape into one small copy;
    # with the batch grid collapsed this layout change cannot be expressed via BlockSpec.
    tgt2 = jnp.transpose(tgt, (1, 0, 2)).reshape(N * L, E)
    mem2 = jnp.transpose(memory, (1, 0, 2)).reshape(N * S, E)

    weight_order = ['wq', 'wk', 'wv', 'bq', 'bk', 'bv', 'wo', 'bo',
                    'w1', 'b1', 'w2', 'b2', 'g2', 'be2', 'g3', 'be3']
    weights = [params[n] for n in weight_order]

    kern = functools.partial(lmd_kernel, nhead=nhead, eps=eps,
                             n_batch=N, tgt_len=L, src_len=S)

    if return_attn:
        out_shape = (jax.ShapeDtypeStruct((N * L, E), jnp.float32),
                     jax.ShapeDtypeStruct((N, L, S), jnp.float32))
    else:
        out_shape = jax.ShapeDtypeStruct((N * L, E), jnp.float32)

    # Single invocation: no grid, full arrays DMA'd to VMEM once, weights never
    # re-fetched.  (For v7x at production shapes, reintroduce a leading "parallel"
    # grid axis over batch/L tiles so both TensorCores get work, and re-derive
    # tile sizes against its 64 MiB VMEM.)
    res = pl.pallas_call(
        kern,
        out_shape=out_shape,
        compiler_params=pltpu.CompilerParams(),
    )(tgt2, mem2, *weights)

    if return_attn:
        out2, attn = res
    else:
        out2, attn = res, None

    out = jnp.transpose(out2.reshape(N, L, E), (1, 0, 2))
    return out, attn


# ----------------------- pure-JAX reference (for validation) -----------------------
def _layernorm(x, g, b, eps):
    mu = jnp.mean(x, axis=-1, keepdims=True)
    xc = x - mu
    var = jnp.mean(xc * xc, axis=-1, keepdims=True)
    return xc / jnp.sqrt(var + eps) * g + b


def lmd_layer_ref(tgt, memory, p, *, nhead, eps=1e-5):
    L, N, E = tgt.shape
    S = memory.shape[0]
    D = E // nhead
    tb = jnp.transpose(tgt, (1, 0, 2))      # (N, L, E)
    mb = jnp.transpose(memory, (1, 0, 2))   # (N, S, E)

    q = jnp.einsum('nle,ef->nlf', tb, p['wq'], precision=HIGH) + p['bq']
    k = jnp.einsum('nse,ef->nsf', mb, p['wk'], precision=HIGH) + p['bk']
    v = jnp.einsum('nse,ef->nsf', mb, p['wv'], precision=HIGH) + p['bv']
    q = q / jnp.sqrt(jnp.float32(D))

    qh = q.reshape(N, L, nhead, D).transpose(0, 2, 1, 3)
    kh = k.reshape(N, S, nhead, D).transpose(0, 2, 1, 3)
    vh = v.reshape(N, S, nhead, D).transpose(0, 2, 1, 3)
    s = jnp.einsum('nhld,nhsd->nhls', qh, kh, precision=HIGH)
    a = jax.nn.softmax(s, axis=-1)
    ctx = jnp.einsum('nhls,nhsd->nhld', a, vh, precision=HIGH)
    ctx = ctx.transpose(0, 2, 1, 3).reshape(N, L, E)
    attn_avg = jnp.mean(a, axis=1)                                   # (N, L, S)

    attn_out = jnp.einsum('nle,ef->nlf', ctx, p['wo'], precision=HIGH) + p['bo']
    x = _layernorm(tb + attn_out, p['g2'], p['be2'], eps)
    h1 = jnp.maximum(jnp.einsum('nle,ef->nlf', x, p['w1'], precision=HIGH) + p['b1'], 0.0)
    ff = jnp.einsum('nlf,fe->nle', h1, p['w2'], precision=HIGH) + p['b2']
    y = _layernorm(x + ff, p['g3'], p['be3'], eps)
    return jnp.transpose(y, (1, 0, 2)), attn_avg


# ----------------------------------- main ------------------------------------------
if __name__ == "__main__":
    # Small shapes consistent with the module's forward.
    L, S, N = 8, 16, 2          # tgt seq len, memory seq len, batch
    d_model, nhead, dim_ff = 32, 4, 64
    eps = 1e-5

    key = jax.random.PRNGKey(0)
    ks = jax.random.split(key, 14)

    # Deterministic synthetic parameters (shapes follow LMDLayer.__init__).
    # Projection weights stored pre-transposed so the kernel computes x @ W + b.
    params = {
        'wq': 0.1 * jax.random.normal(ks[0], (d_model, d_model), jnp.float32),
        'wk': 0.1 * jax.random.normal(ks[1], (d_model, d_model), jnp.float32),
        'wv': 0.1 * jax.random.normal(ks[2], (d_model, d_model), jnp.float32),
        'bq': 0.1 * jax.random.normal(ks[3], (1, d_model), jnp.float32),
        'bk': 0.1 * jax.random.normal(ks[4], (1, d_model), jnp.float32),
        'bv': 0.1 * jax.random.normal(ks[5], (1, d_model), jnp.float32),
        'wo': 0.1 * jax.random.normal(ks[6], (d_model, d_model), jnp.float32),
        'bo': 0.1 * jax.random.normal(ks[7], (1, d_model), jnp.float32),
        'w1': 0.1 * jax.random.normal(ks[8], (d_model, dim_ff), jnp.float32),
        'b1': 0.1 * jax.random.normal(ks[9], (1, dim_ff), jnp.float32),
        'w2': 0.1 * jax.random.normal(ks[10], (dim_ff, d_model), jnp.float32),
        'b2': 0.1 * jax.random.normal(ks[11], (1, d_model), jnp.float32),
        'g2': jnp.ones((1, d_model), jnp.float32),
        'be2': jnp.zeros((1, d_model), jnp.float32),
        'g3': jnp.ones((1, d_model), jnp.float32),
        'be3': jnp.zeros((1, d_model), jnp.float32),
    }

    tgt = jax.random.normal(ks[12], (L, N, d_model), jnp.float32)
    memory = jax.random.normal(ks[13], (S, N, d_model), jnp.float32)

    out, attn_w = lmd_layer_pallas(tgt, memory, params, nhead=nhead, eps=eps)
    out = jax.block_until_ready(out)
    attn_w = jax.block_until_ready(attn_w)

    # Optional-attention path (no second output stream / HBM writeback).
    out_only, _ = lmd_layer_pallas(tgt, memory, params, nhead=nhead, eps=eps,
                                   return_attn=False)
    out_only = jax.block_until_ready(out_only)

    ref_out, ref_attn = lmd_layer_ref(tgt, memory, params, nhead=nhead, eps=eps)

    assert out.shape == (L, N, d_model)
    assert attn_w.shape == (N, L, S)
    # Tolerance sized for default (non-HIGHEST) MXU matmul precision and the
    # approximate EUP reciprocal; typical agreement at these dims is ~1e-3.
    assert jnp.allclose(out, ref_out, rtol=2e-2, atol=2e-2)
    assert jnp.allclose(attn_w, ref_attn, rtol=2e-2, atol=2e-2)
    assert jnp.allclose(out_only, out, rtol=1e-5, atol=1e-5)

    print("KERNEL_OK")
</pallas_src>

<mosaic_0001>
module attributes {stable_mosaic.version = 11 : i64} {
  func.func @lmd_kernel(%arg0: memref<16x32xf32, #tpu.memory_space<vmem>>, %arg1: memref<32x32xf32, #tpu.memory_space<vmem>>, %arg2: memref<32x32xf32, #tpu.memory_space<vmem>>, %arg3: memref<32x32xf32, #tpu.memory_space<vmem>>, %arg4: memref<32x32xf32, #tpu.memory_space<vmem>>, %arg5: memref<1x32xf32, #tpu.memory_space<vmem>>, %arg6: memref<1x32xf32, #tpu.memory_space<vmem>>, %arg7: memref<1x32xf32, #tpu.memory_space<vmem>>, %arg8: memref<32x32xf32, #tpu.memory_space<vmem>>, %arg9: memref<1x32xf32, #tpu.memory_space<vmem>>, %arg10: memref<32x64xf32, #tpu.memory_space<vmem>>, %arg11: memref<1x64xf32, #tpu.memory_space<vmem>>, %arg12: memref<64x32xf32, #tpu.memory_space<vmem>>, %arg13: memref<1x32xf32, #tpu.memory_space<vmem>>, %arg14: memref<1x32xf32, #tpu.memory_space<vmem>>, %arg15: memref<1x32xf32, #tpu.memory_space<vmem>>, %arg16: memref<1x32xf32, #tpu.memory_space<vmem>>, %arg17: memref<1x32xf32, #tpu.memory_space<vmem>>, %arg18: memref<16x32xf32, #tpu.memory_space<vmem>>, %arg19: memref<2x8x16xf32, #tpu.memory_space<vmem>>) attributes {dimension_semantics = [], scalar_prefetch = 0 : i64, scratch_operands = 0 : i64, tpu.core_type = #tpu.core_type<tc>} {
    %c0 = arith.constant 0 : index
    %c0_0 = arith.constant 0 : index
    %0 = vector.load %arg0[%c0, %c0_0] : memref<16x32xf32, #tpu.memory_space<vmem>>, vector<16x32xf32>
    %c0_1 = arith.constant 0 : index
    %c0_2 = arith.constant 0 : index
    %1 = vector.load %arg1[%c0_1, %c0_2] : memref<32x32xf32, #tpu.memory_space<vmem>>, vector<32x32xf32>
    %c0_3 = arith.constant 0 : index
    %c0_4 = arith.constant 0 : index
    %2 = vector.load %arg2[%c0_3, %c0_4] : memref<32x32xf32, #tpu.memory_space<vmem>>, vector<32x32xf32>
    %cst = arith.constant dense<0.000000e+00> : vector<16x32xf32>
    %3 = tpu.matmul %0, %2, %cst {dimension_numbers = #tpu.dot_dimension_numbers<[1], [0], [0], [1], [0, 0, 1, 1], [], []>} : vector<16x32xf32>, vector<32x32xf32>, vector<16x32xf32> -> vector<16x32xf32>
    %c0_5 = arith.constant 0 : index
    %c0_6 = arith.constant 0 : index
    %4 = vector.load %arg5[%c0_5, %c0_6] : memref<1x32xf32, #tpu.memory_space<vmem>>, vector<1x32xf32>
    %5 = vector.broadcast %4 : vector<1x32xf32> to vector<16x32xf32>
    %6 = arith.addf %3, %5 : vector<16x32xf32>
    %c0_7 = arith.constant 0 : index
    %c0_8 = arith.constant 0 : index
    %7 = vector.load %arg3[%c0_7, %c0_8] : memref<32x32xf32, #tpu.memory_space<vmem>>, vector<32x32xf32>
    %cst_9 = arith.constant dense<0.000000e+00> : vector<32x32xf32>
    %8 = tpu.matmul %1, %7, %cst_9 {dimension_numbers = #tpu.dot_dimension_numbers<[1], [0], [0], [1], [0, 0, 1, 1], [], []>} : vector<32x32xf32>, vector<32x32xf32>, vector<32x32xf32> -> vector<32x32xf32>
    %c0_10 = arith.constant 0 : index
    %c0_11 = arith.constant 0 : index
    %9 = vector.load %arg6[%c0_10, %c0_11] : memref<1x32xf32, #tpu.memory_space<vmem>>, vector<1x32xf32>
    %10 = vector.broadcast %9 : vector<1x32xf32> to vector<32x32xf32>
    %11 = arith.addf %8, %10 : vector<32x32xf32>
    %c0_12 = arith.constant 0 : index
    %c0_13 = arith.constant 0 : index
    %12 = vector.load %arg4[%c0_12, %c0_13] : memref<32x32xf32, #tpu.memory_space<vmem>>, vector<32x32xf32>
    %cst_14 = arith.constant dense<0.000000e+00> : vector<32x32xf32>
    %13 = tpu.matmul %1, %12, %cst_14 {dimension_numbers = #tpu.dot_dimension_numbers<[1], [0], [0], [1], [0, 0, 1, 1], [], []>} : vector<32x32xf32>, vector<32x32xf32>, vector<32x32xf32> -> vector<32x32xf32>
    %c0_15 = arith.constant 0 : index
    %c0_16 = arith.constant 0 : index
    %14 = vector.load %arg7[%c0_15, %c0_16] : memref<1x32xf32, #tpu.memory_space<vmem>>, vector<1x32xf32>
    %15 = vector.broadcast %14 : vector<1x32xf32> to vector<32x32xf32>
    %16 = arith.addf %13, %15 : vector<32x32xf32>
    %cst_17 = arith.constant 0.353553385 : f32
    %17 = vector.broadcast %cst_17 : f32 to vector<16x32xf32>
    %18 = arith.mulf %6, %17 : vector<16x32xf32>
    %19 = vector.shape_cast %18 : vector<16x32xf32> to vector<2x8x32xf32>
    %20 = vector.shape_cast %11 : vector<32x32xf32> to vector<2x16x32xf32>
    %21 = vector.shape_cast %16 : vector<32x32xf32> to vector<2x16x32xf32>
    %22 = vector.extract_strided_slice %19 {offsets = [0, 0, 0], sizes = [2, 8, 8], strides = [1, 1, 1]} : vector<2x8x32xf32> to vector<2x8x8xf32>
    %23 = vector.extract_strided_slice %19 {offsets = [0, 0, 8], sizes = [2, 8, 8], strides = [1, 1, 1]} : vector<2x8x32xf32> to vector<2x8x8xf32>
    %24 = vector.extract_strided_slice %19 {offsets = [0, 0, 16], sizes = [2, 8, 8], strides = [1, 1, 1]} : vector<2x8x32xf32> to vector<2x8x8xf32>
    %25 = vector.extract_strided_slice %19 {offsets = [0, 0, 24], sizes = [2, 8, 8], strides = [1, 1, 1]} : vector<2x8x32xf32> to vector<2x8x8xf32>
    %26 = tpu.concatenate %22, %23, %24, %25 in 0 : vector<2x8x8xf32>, vector<2x8x8xf32>, vector<2x8x8xf32>, vector<2x8x8xf32> -> vector<8x8x8xf32>
    %27 = vector.extract_strided_slice %20 {offsets = [0, 0, 0], sizes = [2, 16, 8], strides = [1, 1, 1]} : vector<2x16x32xf32> to vector<2x16x8xf32>
    %28 = vector.extract_strided_slice %20 {offsets = [0, 0, 8], sizes = [2, 16, 8], strides = [1, 1, 1]} : vector<2x16x32xf32> to vector<2x16x8xf32>
    %29 = vector.extract_strided_slice %20 {offsets = [0, 0, 16], sizes = [2, 16, 8], strides = [1, 1, 1]} : vector<2x16x32xf32> to vector<2x16x8xf32>
    %30 = vector.extract_strided_slice %20 {offsets = [0, 0, 24], sizes = [2, 16, 8], strides = [1, 1, 1]} : vector<2x16x32xf32> to vector<2x16x8xf32>
    %31 = tpu.concatenate %27, %28, %29, %30 in 0 : vector<2x16x8xf32>, vector<2x16x8xf32>, vector<2x16x8xf32>, vector<2x16x8xf32> -> vector<8x16x8xf32>
    %32 = vector.extract_strided_slice %21 {offsets = [0, 0, 0], sizes = [2, 16, 8], strides = [1, 1, 1]} : vector<2x16x32xf32> to vector<2x16x8xf32>
    %33 = vector.extract_strided_slice %21 {offsets = [0, 0, 8], sizes = [2, 16, 8], strides = [1, 1, 1]} : vector<2x16x32xf32> to vector<2x16x8xf32>
    %34 = vector.extract_strided_slice %21 {offsets = [0, 0, 16], sizes = [2, 16, 8], strides = [1, 1, 1]} : vector<2x16x32xf32> to vector<2x16x8xf32>
    %35 = vector.extract_strided_slice %21 {offsets = [0, 0, 24], sizes = [2, 16, 8], strides = [1, 1, 1]} : vector<2x16x32xf32> to vector<2x16x8xf32>
    %36 = tpu.concatenate %32, %33, %34, %35 in 0 : vector<2x16x8xf32>, vector<2x16x8xf32>, vector<2x16x8xf32>, vector<2x16x8xf32> -> vector<8x16x8xf32>
    "tpu.trace_start"() <{level = 10 : i32, message = "bld,bsd->bls"}> : () -> ()
    %cst_18 = arith.constant dense<0.000000e+00> : vector<8x8x16xf32>
    %37 = tpu.matmul %26, %31, %cst_18 {dimension_numbers = #tpu.dot_dimension_numbers<[2], [2], [1], [1], [0, 0, 0, 1, 1, 1], [0], [0]>} : vector<8x8x8xf32>, vector<8x16x8xf32>, vector<8x8x16xf32> -> vector<8x8x16xf32>
    "tpu.trace_stop"() : () -> ()
    %cst_19 = arith.constant dense<0xFF800000> : vector<8x8xf32>
    %38 = vector.multi_reduction <maximumf>, %37, %cst_19 [2] : vector<8x8x16xf32> to vector<8x8xf32>
    %39 = vector.shape_cast %38 : vector<8x8xf32> to vector<8x8x1xf32>
    %40 = vector.broadcast %39 : vector<8x8x1xf32> to vector<8x8x16xf32>
    %41 = arith.subf %37, %40 : vector<8x8x16xf32>
    %42 = math.exp %41 : vector<8x8x16xf32>
    %cst_20 = arith.constant dense<0.000000e+00> : vector<8x8xf32>
    %43 = vector.multi_reduction <add>, %42, %cst_20 [2] : vector<8x8x16xf32> to vector<8x8xf32>
    %44 = vector.shape_cast %43 : vector<8x8xf32> to vector<8x8x1xf32>
    %45 = tpu.reciprocal %44 {approx = true} : vector<8x8x1xf32> -> vector<8x8x1xf32>
    %46 = vector.broadcast %45 : vector<8x8x1xf32> to vector<8x8x16xf32>
    %47 = arith.mulf %42, %46 : vector<8x8x16xf32>
    %48 = vector.shape_cast %47 : vector<8x8x16xf32> to vector<4x2x8x16xf32>
    %49 = vector.extract_strided_slice %48 {offsets = [0, 0, 0, 0], sizes = [1, 2, 8, 16], strides = [1, 1, 1, 1]} : vector<4x2x8x16xf32> to vector<1x2x8x16xf32>
    %50 = vector.shape_cast %49 : vector<1x2x8x16xf32> to vector<2x8x16xf32>
    %51 = vector.extract_strided_slice %48 {offsets = [1, 0, 0, 0], sizes = [1, 2, 8, 16], strides = [1, 1, 1, 1]} : vector<4x2x8x16xf32> to vector<1x2x8x16xf32>
    %52 = vector.shape_cast %51 : vector<1x2x8x16xf32> to vector<2x8x16xf32>
    %53 = arith.addf %50, %52 : vector<2x8x16xf32>
    %54 = vector.extract_strided_slice %48 {offsets = [2, 0, 0, 0], sizes = [1, 2, 8, 16], strides = [1, 1, 1, 1]} : vector<4x2x8x16xf32> to vector<1x2x8x16xf32>
    %55 = vector.shape_cast %54 : vector<1x2x8x16xf32> to vector<2x8x16xf32>
    %56 = arith.addf %53, %55 : vector<2x8x16xf32>
    %57 = vector.extract_strided_slice %48 {offsets = [3, 0, 0, 0], sizes = [1, 2, 8, 16], strides = [1, 1, 1, 1]} : vector<4x2x8x16xf32> to vector<1x2x8x16xf32>
    %58 = vector.shape_cast %57 : vector<1x2x8x16xf32> to vector<2x8x16xf32>
    %59 = arith.addf %56, %58 : vector<2x8x16xf32>
    %cst_21 = arith.constant 2.500000e-01 : f32
    %60 = vector.broadcast %cst_21 : f32 to vector<2x8x16xf32>
    %61 = arith.mulf %59, %60 : vector<2x8x16xf32>
    %c0_22 = arith.constant 0 : index
    %c0_23 = arith.constant 0 : index
    %c0_24 = arith.constant 0 : index
    %62 = vector.load %arg19[%c0_22, %c0_23, %c0_24] : memref<2x8x16xf32, #tpu.memory_space<vmem>>, vector<2x8x16xf32>
    tpu.vector_store %arg19[%c0_22, %c0_23, %c0_24], %61 {strides = array<i32>} : memref<2x8x16xf32, #tpu.memory_space<vmem>>, vector<2x8x16xf32>,
    "tpu.trace_start"() <{level = 10 : i32, message = "bls,bsd->bld"}> : () -> ()
    %cst_25 = arith.constant dense<0.000000e+00> : vector<8x8x8xf32>
    %63 = tpu.matmul %47, %36, %cst_25 {dimension_numbers = #tpu.dot_dimension_numbers<[2], [1], [1], [2], [0, 0, 0, 1, 1, 2], [0], [0]>} : vector<8x8x16xf32>, vector<8x16x8xf32>, vector<8x8x8xf32> -> vector<8x8x8xf32>
    "tpu.trace_stop"() : () -> ()
    %64 = vector.shape_cast %63 : vector<8x8x8xf32> to vector<4x2x8x8xf32>
    %65 = vector.extract_strided_slice %64 {offsets = [0, 0, 0, 0], sizes = [1, 2, 8, 8], strides = [1, 1, 1, 1]} : vector<4x2x8x8xf32> to vector<1x2x8x8xf32>
    %66 = vector.shape_cast %65 : vector<1x2x8x8xf32> to vector<2x8x8xf32>
    %67 = vector.extract_strided_slice %64 {offsets = [1, 0, 0, 0], sizes = [1, 2, 8, 8], strides = [1, 1, 1, 1]} : vector<4x2x8x8xf32> to vector<1x2x8x8xf32>
    %68 = vector.shape_cast %67 : vector<1x2x8x8xf32> to vector<2x8x8xf32>
    %69 = vector.extract_strided_slice %64 {offsets = [2, 0, 0, 0], sizes = [1, 2, 8, 8], strides = [1, 1, 1, 1]} : vector<4x2x8x8xf32> to vector<1x2x8x8xf32>
    %70 = vector.shape_cast %69 : vector<1x2x8x8xf32> to vector<2x8x8xf32>
    %71 = vector.extract_strided_slice %64 {offsets = [3, 0, 0, 0], sizes = [1, 2, 8, 8], strides = [1, 1, 1, 1]} : vector<4x2x8x8xf32> to vector<1x2x8x8xf32>
    %72 = vector.shape_cast %71 : vector<1x2x8x8xf32> to vector<2x8x8xf32>
    %73 = tpu.concatenate %66, %68, %70, %72 in 2 : vector<2x8x8xf32>, vector<2x8x8xf32>, vector<2x8x8xf32>, vector<2x8x8xf32> -> vector<2x8x32xf32>
    %74 = vector.shape_cast %73 : vector<2x8x32xf32> to vector<16x32xf32>
    %c0_26 = arith.constant 0 : index
    %c0_27 = arith.constant 0 : index
    %75 = vector.load %arg8[%c0_26, %c0_27] : memref<32x32xf32, #tpu.memory_space<vmem>>, vector<32x32xf32>
    %cst_28 = arith.constant dense<0.000000e+00> : vector<16x32xf32>
    %76 = tpu.matmul %74, %75, %cst_28 {dimension_numbers = #tpu.dot_dimension_numbers<[1], [0], [0], [1], [0, 0, 1, 1], [], []>} : vector<16x32xf32>, vector<32x32xf32>, vector<16x32xf32> -> vector<16x32xf32>
    %c0_29 = arith.constant 0 : index
    %c0_30 = arith.constant 0 : index
    %77 = vector.load %arg9[%c0_29, %c0_30] : memref<1x32xf32, #tpu.memory_space<vmem>>, vector<1x32xf32>
    %78 = vector.broadcast %77 : vector<1x32xf32> to vector<16x32xf32>
    %79 = arith.addf %76, %78 : vector<16x32xf32>
    %80 = arith.addf %0, %79 : vector<16x32xf32>
    %cst_31 = arith.constant dense<0.000000e+00> : vector<16xf32>
    %81 = vector.multi_reduction <add>, %80, %cst_31 [1] : vector<16x32xf32> to vector<16xf32>
    %82 = vector.shape_cast %81 : vector<16xf32> to vector<16x1xf32>
    %cst_32 = arith.constant 3.200000e+01 : f32
    %83 = vector.broadcast %cst_32 : f32 to vector<16x1xf32>
    %84 = arith.divf %82, %83 : vector<16x1xf32>
    %85 = vector.broadcast %84 : vector<16x1xf32> to vector<16x32xf32>
    %86 = arith.subf %80, %85 : vector<16x32xf32>
    %87 = arith.mulf %86, %86 : vector<16x32xf32>
    %cst_33 = arith.constant dense<0.000000e+00> : vector<16xf32>
    %88 = vector.multi_reduction <add>, %87, %cst_33 [1] : vector<16x32xf32> to vector<16xf32>
    %89 = vector.shape_cast %88 : vector<16xf32> to vector<16x1xf32>
    %cst_34 = arith.constant 3.200000e+01 : f32
    %90 = vector.broadcast %cst_34 : f32 to vector<16x1xf32>
    %91 = arith.divf %89, %90 : vector<16x1xf32>
    %cst_35 = arith.constant 9.99999974E-6 : f32
    %92 = vector.broadcast %cst_35 : f32 to vector<16x1xf32>
    %93 = arith.addf %91, %92 : vector<16x1xf32>
    %94 = math.rsqrt %93 : vector<16x1xf32>
    %95 = vector.broadcast %94 : vector<16x1xf32> to vector<16x32xf32>
    %96 = arith.mulf %86, %95 : vector<16x32xf32>
    %c0_36 = arith.constant 0 : index
    %c0_37 = arith.constant 0 : index
    %97 = vector.load %arg14[%c0_36, %c0_37] : memref<1x32xf32, #tpu.memory_space<vmem>>, vector<1x32xf32>
    %98 = vector.broadcast %97 : vector<1x32xf32> to vector<16x32xf32>
    %99 = arith.mulf %96, %98 : vector<16x32xf32>
    %c0_38 = arith.constant 0 : index
    %c0_39 = arith.constant 0 : index
    %100 = vector.load %arg15[%c0_38, %c0_39] : memref<1x32xf32, #tpu.memory_space<vmem>>, vector<1x32xf32>
    %101 = vector.broadcast %100 : vector<1x32xf32> to vector<16x32xf32>
    %102 = arith.addf %99, %101 : vector<16x32xf32>
    %c0_40 = arith.constant 0 : index
    %c0_41 = arith.constant 0 : index
    %103 = vector.load %arg10[%c0_40, %c0_41] : memref<32x64xf32, #tpu.memory_space<vmem>>, vector<32x64xf32>
    %cst_42 = arith.constant dense<0.000000e+00> : vector<16x64xf32>
    %104 = tpu.matmul %102, %103, %cst_42 {dimension_numbers = #tpu.dot_dimension_numbers<[1], [0], [0], [1], [0, 0, 1, 1], [], []>} : vector<16x32xf32>, vector<32x64xf32>, vector<16x64xf32> -> vector<16x64xf32>
    %c0_43 = arith.constant 0 : index
    %c0_44 = arith.constant 0 : index
    %105 = vector.load %arg11[%c0_43, %c0_44] : memref<1x64xf32, #tpu.memory_space<vmem>>, vector<1x64xf32>
    %106 = vector.broadcast %105 : vector<1x64xf32> to vector<16x64xf32>
    %107 = arith.addf %104, %106 : vector<16x64xf32>
    %cst_45 = arith.constant 0.000000e+00 : f32
    %108 = vector.broadcast %cst_45 : f32 to vector<16x64xf32>
    %109 = arith.maximumf %107, %108 : vector<16x64xf32>
    %c0_46 = arith.constant 0 : index
    %c0_47 = arith.constant 0 : index
    %110 = vector.load %arg12[%c0_46, %c0_47] : memref<64x32xf32, #tpu.memory_space<vmem>>, vector<64x32xf32>
    %cst_48 = arith.constant dense<0.000000e+00> : vector<16x32xf32>
    %111 = tpu.matmul %109, %110, %cst_48 {dimension_numbers = #tpu.dot_dimension_numbers<[1], [0], [0], [1], [0, 0, 1, 1], [], []>} : vector<16x64xf32>, vector<64x32xf32>, vector<16x32xf32> -> vector<16x32xf32>
    %c0_49 = arith.constant 0 : index
    %c0_50 = arith.constant 0 : index
    %112 = vector.load %arg13[%c0_49, %c0_50] : memref<1x32xf32, #tpu.memory_space<vmem>>, vector<1x32xf32>
    %113 = vector.broadcast %112 : vector<1x32xf32> to vector<16x32xf32>
    %114 = arith.addf %111, %113 : vector<16x32xf32>
    %115 = arith.addf %102, %114 : vector<16x32xf32>
    %cst_51 = arith.constant dense<0.000000e+00> : vector<16xf32>
    %116 = vector.multi_reduction <add>, %115, %cst_51 [1] : vector<16x32xf32> to vector<16xf32>
    %117 = vector.shape_cast %116 : vector<16xf32> to vector<16x1xf32>
    %cst_52 = arith.constant 3.200000e+01 : f32
    %118 = vector.broadcast %cst_52 : f32 to vector<16x1xf32>
    %119 = arith.divf %117, %118 : vector<16x1xf32>
    %120 = vector.broadcast %119 : vector<16x1xf32> to vector<16x32xf32>
    %121 = arith.subf %115, %120 : vector<16x32xf32>
    %122 = arith.mulf %121, %121 : vector<16x32xf32>
    %cst_53 = arith.constant dense<0.000000e+00> : vector<16xf32>
    %123 = vector.multi_reduction <add>, %122, %cst_53 [1] : vector<16x32xf32> to vector<16xf32>
    %124 = vector.shape_cast %123 : vector<16xf32> to vector<16x1xf32>
    %cst_54 = arith.constant 3.200000e+01 : f32
    %125 = vector.broadcast %cst_54 : f32 to vector<16x1xf32>
    %126 = arith.divf %124, %125 : vector<16x1xf32>
    %cst_55 = arith.constant 9.99999974E-6 : f32
    %127 = vector.broadcast %cst_55 : f32 to vector<16x1xf32>
    %128 = arith.addf %126, %127 : vector<16x1xf32>
    %129 = math.rsqrt %128 : vector<16x1xf32>
    %130 = vector.broadcast %129 : vector<16x1xf32> to vector<16x32xf32>
    %131 = arith.mulf %121, %130 : vector<16x32xf32>
    %c0_56 = arith.constant 0 : index
    %c0_57 = arith.constant 0 : index
    %132 = vector.load %arg16[%c0_56, %c0_57] : memref<1x32xf32, #tpu.memory_space<vmem>>, vector<1x32xf32>
    %133 = vector.broadcast %132 : vector<1x32xf32> to vector<16x32xf32>
    %134 = arith.mulf %131, %133 : vector<16x32xf32>
    %c0_58 = arith.constant 0 : index
    %c0_59 = arith.constant 0 : index
    %135 = vector.load %arg17[%c0_58, %c0_59] : memref<1x32xf32, #tpu.memory_space<vmem>>, vector<1x32xf32>
    %136 = vector.broadcast %135 : vector<1x32xf32> to vector<16x32xf32>
    %137 = arith.addf %134, %136 : vector<16x32xf32>
    %c0_60 = arith.constant 0 : index
    %c0_61 = arith.constant 0 : index
    %138 = vector.load %arg18[%c0_60, %c0_61] : memref<16x32xf32, #tpu.memory_space<vmem>>, vector<16x32xf32>
    tpu.vector_store %arg18[%c0_60, %c0_61], %137 {strides = array<i32>} : memref<16x32xf32, #tpu.memory_space<vmem>>, vector<16x32xf32>,
    return
  }
}

</mosaic_0001>

<bundles_post_ra>
// kernel: tpu_custom_call.1
= control target key start
LH: loop header
LB: loop body
LE: loop exit
PB: predicated region body
PF: predicated region fallthrough
CT: control target
= control target key end

     0   :  { %s3247_s0 = inlined_call_operand.hbm [shape: f32[16,32], index: 0, kind: input, shape index: {}]   ;;  %s3248_s1 = inlined_call_operand.vmem [shape: f32[32,32], index: 1, kind: input, shape index: {}]   ;;  %s3249_s2 = inlined_call_operand.vmem [shape: f32[32,32], index: 2, kind: input, shape index: {}]   ;;  %s3250_s3 = inlined_call_operand.vmem [shape: f32[32,32], index: 3, kind: input, shape index: {}]   ;;  %s3251_s4 = inlined_call_operand.hbm [shape: f32[32,32], index: 4, kind: input, shape index: {}]   ;;  %s3252_s5 = inlined_call_operand.vmem [shape: f32[1,32], index: 5, kind: input, shape index: {}]   ;;  %s3253_s6 = inlined_call_operand.vmem [shape: f32[1,32], index: 6, kind: input, shape index: {}]   ;;  %s3254_s7 = inlined_call_operand.vmem [shape: f32[1,32], index: 7, kind: input, shape index: {}]   ;;  %s3255_s8 = inlined_call_operand.hbm [shape: f32[32,32], index: 8, kind: input, shape index: {}]   ;;  %s3256_s9 = inlined_call_operand.vmem [shape: f32[1,32], index: 9, kind: input, shape index: {}]   ;;  %s3257_s10 = inlined_call_operand.hbm [shape: f32[32,64], index: 10, kind: input, shape index: {}]   ;;  %s3258_s11 = inlined_call_operand.vmem [shape: f32[1,64], index: 11, kind: input, shape index: {}]   ;;  %s3259_s12 = inlined_call_operand.vmem [shape: f32[64,32], index: 12, kind: input, shape index: {}]   ;;  %s3260_s13 = inlined_call_operand.vmem [shape: f32[1,32], index: 13, kind: input, shape index: {}]   ;;  %s3261_s14 = inlined_call_operand.vmem [shape: f32[1,32], index: 14, kind: input, shape index: {}]   ;;  %s3262_s15 = inlined_call_operand.vmem [shape: f32[1,32], index: 15, kind: input, shape index: {}]   ;;  %s3263_s16 = inlined_call_operand.vmem [shape: f32[1,32], index: 16, kind: input, shape index: {}]   ;;  %s3264_s17 = inlined_call_operand.vmem [shape: f32[1,32], index: 17, kind: input, shape index: {}]   ;;  %s3265_s18 = inlined_call_operand.hbm [shape: f32[16,32], index: 18, kind: output, shape index: {0}]   ;;  %s3266_s19 = inlined_call_operand.hbm [shape: f32[2,8,16], index: 19, kind: output, shape index: {1}]  }
   0x1   :  { %3270 = sst [smem:[#allocation18_spill]] %s3247_s0 }
   0x2   :  { %3271 = sst [smem:[#allocation19_spill]] %s3248_s1 }
   0x3   :  { %3272 = sst [smem:[#allocation20_spill]] %s3249_s2 }
   0x4   :  { %3273 = sst [smem:[#allocation21_spill]] %s3250_s3 }
   0x5   :  { %25 = vsyncpa [#allocation3], 0 }
   0x6   :  { %26 = vsyncpa [#allocation6], 0 }
   0x7   :  { %27 = vsyncpa [#allocation9], 0 }
   0x8   :  { %28 = vsyncpa [#allocation4], 0 }
   0x9   :  { %29 = vsyncpa [#allocation12], 0  ;;  %s2768_s0 = smov [#allocation5]   ;;  %s2769_s20 = smov [#allocation2]  }
   0xa   :  { %s53_s30 = sshll.u32 %s2768_s0, 4  ;;  %s35_s21 = sshll.u32 %s2769_s20, 4  ;;  %s54_s30 = int_to_ptr.vmem [resolvable:$true] %s53_s30  ;;  %s36_s21 = int_to_ptr.vmem [resolvable:$true] %s35_s21 }
   0xb   :  { %s2646_s1 = scalar_lea.vmem %s54_s30, 512  ;;  %p2651_p1 = scmp.lt.s32.totalorder %s54_s30, %s54_s30 }
   0xc   :  { %p2647_p0 = scmp.ne.s32.totalorder %s54_s30, %s2646_s1  ;;  %p2652_p2 = scmp.lt.s32.totalorder %s2646_s1, %s2646_s1 }
   0xe   :  { %p2653_p3 = por %p2652_p2, %p2651_p1 }
  0x10   :  { %p2654_p4 = pnand %p2653_p3, %p2647_p0 }
  0x12   :  { %2657 = shalt.err (!%p2654_p4)
}
  0x13   :  { %s2770_s22 = smov 128   ;;  %s2771_s2 = smov 8  }
  0x14   :  { %59 = dma.hbm_to_vmem [thread:$0]  %s3251_s4, 512, %s54_s30, [#allocation6], %s2770_s22, %s2770_s22, %s2771_s2  }
  0x15   :  { %s2666_s25 = scalar_lea.vmem %s36_s21, 256  ;;  %p2671_p6 = scmp.lt.s32.totalorder %s36_s21, %s36_s21 }
  0x16   :  { %p2667_p5 = scmp.ne.s32.totalorder %s36_s21, %s2666_s25  ;;  %p2672_p7 = scmp.lt.s32.totalorder %s2666_s25, %s2666_s25 }
  0x18   :  { %p2673_p8 = por %p2672_p7, %p2671_p6 }
  0x1a   :  { %p2674_p9 = pnand %p2673_p8, %p2667_p5 }
  0x1c   :  { %2677 = shalt.err (!%p2674_p9)
}
  0x1d   :  { %s3274_s27 = sld [smem:[#allocation18_spill]]  ;;  %s2772_s28 = smov [#allocation7]  }
  0x1e   :  { %s71_s29 = sshll.u32 %s2772_s28, 4  ;;  %s2773_s0 = smov [#allocation8]   ;;  %s72_s29 = int_to_ptr.vmem [resolvable:$true] %s71_s29 }
  0x1f   :  { %s85_s20 = sshll.u32 %s2773_s0, 4  ;;  %s2686_s4 = scalar_lea.vmem %s72_s29, 512  ;;  %s86_s20 = int_to_ptr.vmem [resolvable:$true] %s85_s20 }
  0x20   :  { %p2687_p10 = scmp.ne.s32.totalorder %s72_s29, %s2686_s4  ;;  %p2691_p11 = scmp.lt.s32.totalorder %s72_s29, %s72_s29 }
  0x21   :  { %p2692_p12 = scmp.lt.s32.totalorder %s2686_s4, %s2686_s4 }
  0x23   :  { %41 = dma.hbm_to_vmem [thread:$0]  %s3274_s27, 256, %s36_s21, [#allocation3], %s2770_s22, %s2770_s22, %s2771_s2  }
  0x24   :  { %p2693_p13 = por %p2692_p12, %p2691_p11 }
  0x26   :  { %p2694_p0 = pnand %p2693_p13, %p2687_p10 }
  0x28   :  { %2697 = shalt.err (!%p2694_p0)
}
  0x29   :  { %77 = dma.hbm_to_vmem [thread:$0]  %s3255_s8, 512, %s72_s29, [#allocation6], %s2770_s22, %s2770_s22, %s2771_s2  }
  0x2a   :  { %s2706_s21 = scalar_lea.vmem %s86_s20, 512  ;;  %p2711_p2 = scmp.lt.s32.totalorder %s86_s20, %s86_s20 }
  0x2b   :  { %p2707_p1 = scmp.ne.s32.totalorder %s86_s20, %s2706_s21  ;;  %p2712_p3 = scmp.lt.s32.totalorder %s2706_s21, %s2706_s21 }
  0x2d   :  { %p2713_p4 = por %p2712_p3, %p2711_p2 }
  0x2f   :  { %p2714_p5 = pnand %p2713_p4, %p2707_p1 }
  0x31   :  { %2717 = shalt.err (!%p2714_p5)
}
  0x32   :  { %91 = dma.hbm_to_vmem [thread:$0]  %s3257_s10, 512, %s86_s20, [#allocation9], %s2770_s22, %s2770_s22, %s2771_s2  }
  0x33   :  { %2758 = dma.done.wait [#allocation3], 256  }
  0x34   :  { %2759 = vsyncadd [#allocation3], 4294967040 }
  0x35   :  { %2760 = dma.done.wait [#allocation6], 1024  }
  0x36   :  { %2761 = vsyncadd [#allocation6], 4294966272 }
  0x37   :  { %2762 = dma.done.wait [#allocation9], 512  }
  0x38   :  { %2763 = vsyncadd [#allocation9], 4294966784  ;;  %vm135_vm0 = vcmask 261120   ;;  %s3275_s3 = sld [smem:[#allocation20_spill]]  ;;  %v2913_v2 = vld [vmem:[#allocation2] sm:$0xff]  ;;  %v2927_v6 = vld [vmem:[#allocation2 + $0x8] sm:$0xff] }
  0x39   :  { %2399 = vmatprep.mubr.msk.f32.mxu1 %vm135_vm0, %v2913_v2  ;;  %s3276_s20 = sld [smem:[#allocation19_spill]]  ;;  %v328_v14 = vld [vmem:[#allocation5 + $0x18] sm:$0xff]  ;;  %v327_v15 = vld [vmem:[#allocation5 + $0x10] sm:$0xff]  ;;  %v326_v16 = vld [vmem:[#allocation5 + $0x8] sm:$0xff]  ;;  %v2774_v17 = vmov 0.0   ;;  %vm2775_vm1 = vmmov 0  }
  0x3a   :  { %s3277_s23 = sld [smem:[#allocation21_spill]]  ;;  %2416 = vmatprep.subr.mxu0 %v328_v14  ;;  %v325_v18 = vld [vmem:[#allocation5] sm:$0xff]  ;;  %v2241_v20 = vld [vmem:[%s3252_s5] ss:$0 sm:$0xff]  ;;  %s2776_s24 = smov 120   ;;  %vm505_vm2 = vcmask 64512  }
  0x3b   :  { %2417 = vmatpush3.msra.mxu0 %v328_v14  ;;  %v2244_v24 = vld [vmem:[%s3253_s6] ss:$0 sm:$0xff]  ;;  %s2777_s8 = smov 112   ;;  %s2778_s5 = smov 104   ;;  %vm1114_vm3 = vcmask 130048   ;;  %vm1825_vm4 = vcmask 195584  }
  0x3c   :  { %2418 = vmatprep.subr.mxu0 %v327_v15  ;;  %v3006_v37 = vld [vmem:[%s3254_s7] ss:$0 sm:$0xff]  ;;  %s2779_s7 = smov 16   ;;  %vm2076_vm5 = vcmask 523264  }
  0x3d   :  { %2419 = vmatpush3.msra.mxu0 %v327_v15 }
  0x3e   :  { %v127_v0 = vld [vmem:[%s3275_s3 + $0x18] sm:$0xff]  ;;  %v126_v1 = vld [vmem:[%s3275_s3 + $0x10] sm:$0xff]  ;;  %v125_v3 = vld [vmem:[%s3275_s3 + $0x8] sm:$0xff]  ;;  %2420 = vmatprep.subr.mxu0 %v326_v16 }
  0x3f   :  { %2391 = vmatprep.subr.mxu1 %v127_v0  ;;  %v120_v4 = vld [vmem:[%s3276_s20] sm:$0xff]  ;;  %v121_v11 = vld [vmem:[%s3276_s20 + $0x8] sm:$0xff]  ;;  %v122_v12 = vld [vmem:[%s3276_s20 + $0x10] sm:$0xff]  ;;  %2421 = vmatpush3.msra.mxu0 %v326_v16 }
  0x40   :  { %2392 = vmatpush3.msra.mxu1 %v127_v0  ;;  %v124_v5 = vld [vmem:[%s3275_s3] sm:$0xff]  ;;  %2424 = vmatprep.mubr.msk.f32.mxu0 %vm135_vm0, %v120_v4  ;;  %v220_v7 = vld [vmem:[%s3277_s23 + $0x18] sm:$0xff]  ;;  %v219_v8 = vld [vmem:[%s3277_s23 + $0x10] sm:$0xff]  ;;  %s2780_s3 = smov 24  }
  0x41   :  { %2393 = vmatprep.subr.mxu1 %v126_v1  ;;  %v218_v9 = vld [vmem:[%s3277_s23 + $0x8] sm:$0xff]  ;;  %v217_v10 = vld [vmem:[%s3277_s23] sm:$0xff]  ;;  %v123_v13 = vld [vmem:[%s3276_s20 + $0x18] sm:$0xff]  ;;  %2422 = vmatprep.subr.mxu0 %v325_v18 }
  0x42   :  { %2394 = vmatpush3.msra.mxu1 %v126_v1  ;;  %2423 = vmatpush3.msra.mxu0 %v325_v18 }
  0x43   :  { %2395 = vmatprep.subr.mxu1 %v125_v3  ;;  %2425 = vmatmul.mubr.msk.f32.vlgmr.msra.gmra.mxu0 %vm135_vm0, %v121_v11 }
  0x44   :  { %2396 = vmatpush3.msra.mxu1 %v125_v3  ;;  %2437 = vmatprep.subr.mxu0 %v2774_v17 }
  0x45   :  { %2397 = vmatprep.subr.mxu1 %v124_v5  ;;  %2427 = vmatprep.mubr.msk.f32.mxu0 %vm135_vm0, %v122_v12 }
  0x46   :  { %2398 = vmatpush3.msra.mxu1 %v124_v5 }
  0x47   :  { %2400 = vmatmul.mubr.msk.f32.vlgmr.msra.gmra.mxu1 %vm135_vm0, %v2927_v6  ;;  %2402 = vmatprep.subr.mxu1 %v220_v7 }
  0x48   :  { %2403 = vmatpush3.msra.mxu1 %v220_v7  ;;  %2410 = vmatprep.mubr.msk.f32.mxu1 %vm135_vm0, %v120_v4 }
  0x49   :  { %2404 = vmatprep.subr.mxu1 %v219_v8  ;;  %2428 = vmatmul.mubr.msk.f32.gmra.mxu0 %vm135_vm0, %v123_v13 }
  0x4a   :  { %2405 = vmatpush3.msra.mxu1 %v219_v8  ;;  %2441 = vmatprep.mubr.msk.f32.mxu0 %vm2775_vm1, %v2774_v17 }
  0x4b   :  { %2406 = vmatprep.subr.mxu1 %v218_v9 }
  0x4c   :  { %2407 = vmatpush3.msra.mxu1 %v218_v9 }
  0x4d   :  { %2408 = vmatprep.subr.mxu1 %v217_v10 }
  0x4e   :  { %2409 = vmatpush3.msra.mxu1 %v217_v10 }
  0x4f   :  { %2411 = vmatmul.mubr.msk.f32.vlgmr.msra.gmra.mxu1 %vm135_vm0, %v121_v11  ;;  %2430 = vmatprep.subr.mxu1 %v2774_v17 }
  0x50   :  { %2413 = vmatprep.mubr.msk.f32.mxu1 %vm135_vm0, %v122_v12 }
  0x53   :  { %2414 = vmatmul.mubr.msk.f32.gmra.mxu1 %vm135_vm0, %v123_v13 }
  0x54   :  { %2434 = vmatprep.mubr.msk.f32.mxu1 %vm2775_vm1, %v2774_v17 }
 0x103   :  { %v2426_v35 = vpop.f32.mrf.mxu0 }
 0x104   :  { %v408_v55 = vadd.f32 %v2426_v35, %v3006_v37 }
 0x105   :  { %v402_v36 = vpop.f32.mrf.mxu0 }
 0x106   :  { %v3047_v58 = vadd.f32 %v3006_v37, %v402_v36 }
 0x107   :  { %v2401_v19 = vpop.f32.mrf.mxu1 }
 0x108   :  { %v214_v31 = vadd.f32 %v2401_v19, %v2241_v20 }
 0x109   :  { %v208_v21 = vpop.f32.mrf.mxu1  ;;  %v2429_v38 = vpop.f32.mrf.mxu0 }
 0x10a   :  { %v209_v22 = vadd.f32 %v2241_v20, %v208_v21  ;;  %v422_v34 = vmul.f32 0.35355338, %v214_v31  ;;  %v3009_v39 = vadd.f32 %v2429_v38, %v3006_v37 }
 0x10b   :  { %v412_v60 = vpop.f32.mrf.mxu0 }
 0x10c   :  { %v421_v23 = vmul.f32 0.35355338, %v209_v22 }
 0x10e   :  { %425 = vrot.lane.b32.xlu0 %v421_v23, %s2776_s24 }
 0x10f   :  { %v2412_v25 = vpop.f32.mrf.mxu1 }
 0x110   :  { %v312_v26 = vadd.f32 %v2412_v25, %v2244_v24 }
 0x111   :  { %v306_v27 = vpop.f32.mrf.mxu1 }
 0x112   :  { %451 = vrot.lane.b32.xlu1 %v312_v26, %s2777_s8  ;;  %2431 = vmatpush3.xpose.msk.msra.mxu1 %vm505_vm2, %v312_v26  ;;  %v307_v29 = vadd.f32 %v2244_v24, %v306_v27 }
 0x113   :  { %443 = vrot.lane.b32.xlu0 %v312_v26, %s2776_s24  ;;  %v2415_v28 = vpop.f32.mrf.mxu1  ;;  %2432 = vmatprep.subr.mxu1 %v2774_v17 }
 0x114   :  { %v322_v30 = vadd.f32 %v2415_v28, %v2244_v24 }
 0x115   :  { %v316_v32 = vpop.f32.mrf.mxu1 }
 0x116   :  { %v317_v33 = vadd.f32 %v2244_v24, %v316_v32  ;;  %2438 = vmatpush3.xpose.msk.msra.mxu0 %vm505_vm2, %v322_v30  ;;  %441 = vrot.lane.b32.xlu1 %v307_v29, %s2776_s24  ;;  %v3072_v24 = vadd.f32 %v3006_v37, %v412_v60 }
 0x117   :  { %2433 = vmatpush3.xpose.msk.msra.mxu1 %vm505_vm2, %v307_v29  ;;  %447 = vrot.lane.b32.xlu0 %v322_v30, %s2776_s24 }
 0x118   :  { %2439 = vmatprep.subr.mxu0 %v2774_v17  ;;  %2444 = vmatprep.subr.mxu1 %v2774_v17 }
 0x11a   :  { %2435 = vmatmul.mubr.msk.f32.vlgmr.msra.gmra.mxu1 %vm505_vm2, %v421_v23  ;;  %2440 = vmatpush3.xpose.msk.msra.mxu0 %vm505_vm2, %v317_v33 }
 0x11b   :  { %455 = vrot.lane.b32.xlu1 %v322_v30, %s2777_s8  ;;  %427 = vrot.lane.b32.xlu0 %v422_v34, %s2776_s24 }
 0x11c   :  { %2448 = vmatprep.mubr.msk.f32.mxu1 %vm2775_vm1, %v2774_v17  ;;  %2451 = vmatprep.subr.mxu0 %v2774_v17 }
 0x11d   :  { %2442 = vmatmul.mubr.msk.f32.vlgmr.msra.gmra.mxu0 %vm505_vm2, %v422_v34 }
 0x11e   :  { %2455 = vmatprep.mubr.msk.f32.mxu0 %vm2775_vm1, %v2774_v17 }
 0x11f   :  { %445 = vrot.lane.b32.xlu1 %v317_v33, %s2776_s24  ;;  %449 = vrot.lane.b32.xlu0 %v307_v29, %s2777_s8 }
 0x123   :  { %459 = vrot.lane.b32.xlu1 %v312_v26, %s2778_s5  ;;  %429 = vrot.lane.b32.xlu0 %v421_v23, %s2777_s8 }
 0x127   :  { %453 = vrot.lane.b32.xlu1 %v317_v33, %s2777_s8  ;;  %431 = vrot.lane.b32.xlu0 %v422_v34, %s2777_s8 }
 0x12b   :  { %463 = vrot.lane.b32.xlu1 %v322_v30, %s2778_s5  ;;  %457 = vrot.lane.b32.xlu0 %v307_v29, %s2778_s5 }
 0x12f   :  { %461 = vrot.lane.b32.xlu1 %v317_v33, %s2778_s5  ;;  %433 = vrot.lane.b32.xlu0 %v421_v23, %s2778_s5 }
 0x133   :  { %435 = vrot.lane.b32.xlu1 %v422_v34, %s2778_s5 }
 0x180   :  { %v426_v40 = vpop.permute.xlu0 %425 }
 0x184   :  { %v452_v41 = vpop.permute.xlu1 %451 }
 0x185   :  { %v444_v42 = vpop.permute.xlu0 %443 }
 0x186   :  { %2445 = vmatpush3.xpose.msk.msra.mxu1 %vm505_vm2, %v444_v42 }
 0x187   :  { %2446 = vmatprep.subr.mxu1 %v2774_v17 }
 0x188   :  { %v442_v43 = vpop.permute.xlu1 %441 }
 0x189   :  { %v448_v44 = vpop.permute.xlu0 %447 }
 0x18a   :  { %2447 = vmatpush3.xpose.msk.msra.mxu1 %vm505_vm2, %v442_v43  ;;  %2452 = vmatpush3.xpose.msk.msra.mxu0 %vm505_vm2, %v448_v44 }
 0x18b   :  { %2458 = vmatprep.subr.mxu1 %v2774_v17  ;;  %2453 = vmatprep.subr.mxu0 %v2774_v17 }
 0x18d   :  { %v456_v45 = vpop.permute.xlu1 %455  ;;  %v428_v46 = vpop.permute.xlu0 %427  ;;  %2449 = vmatmul.mubr.msk.f32.vlgmr.msra.gmra.mxu1 %vm505_vm2, %v426_v40 }
 0x18e   :  { %2459 = vmatpush3.xpose.msk.msra.mxu1 %vm505_vm2, %v452_v41  ;;  %2462 = vmatprep.mubr.msk.f32.mxu1 %vm2775_vm1, %v2774_v17 }
 0x18f   :  { %2460 = vmatprep.subr.mxu1 %v2774_v17 }
 0x191   :  { %v446_v47 = vpop.permute.xlu1 %445  ;;  %v450_v48 = vpop.permute.xlu0 %449 }
 0x192   :  { %2454 = vmatpush3.xpose.msk.msra.mxu0 %vm505_vm2, %v446_v47  ;;  %2461 = vmatpush3.xpose.msk.msra.mxu1 %vm505_vm2, %v450_v48 }
 0x193   :  { %2465 = vmatprep.subr.mxu0 %v2774_v17  ;;  %2472 = vmatprep.subr.mxu1 %v2774_v17 }
 0x195   :  { %v460_v49 = vpop.permute.xlu1 %459  ;;  %2456 = vmatmul.mubr.msk.f32.vlgmr.msra.gmra.mxu0 %vm505_vm2, %v428_v46  ;;  %v430_v50 = vpop.permute.xlu0 %429 }
 0x196   :  { %2463 = vmatmul.mubr.msk.f32.vlgmr.msra.gmra.mxu1 %vm505_vm2, %v430_v50  ;;  %2466 = vmatpush3.xpose.msk.msra.mxu0 %vm505_vm2, %v456_v45 }
 0x197   :  { %2473 = vmatpush3.xpose.msk.msra.mxu1 %vm505_vm2, %v460_v49  ;;  %2467 = vmatprep.subr.mxu0 %v2774_v17 }
 0x198   :  { %2469 = vmatprep.mubr.msk.f32.mxu0 %vm2775_vm1, %v2774_v17  ;;  %2474 = vmatprep.subr.mxu1 %v2774_v17 }
 0x199   :  { %v454_v51 = vpop.permute.xlu1 %453  ;;  %v432_v52 = vpop.permute.xlu0 %431  ;;  %2476 = vmatprep.mubr.msk.f32.mxu1 %vm2775_vm1, %v2774_v17 }
 0x19a   :  { %2468 = vmatpush3.xpose.msk.msra.mxu0 %vm505_vm2, %v454_v51 }
 0x19b   :  { %2479 = vmatprep.subr.mxu0 %v2774_v17 }
 0x19d   :  { %v464_v53 = vpop.permute.xlu1 %463  ;;  %2470 = vmatmul.mubr.msk.f32.vlgmr.msra.gmra.mxu0 %vm505_vm2, %v432_v52  ;;  %v458_v54 = vpop.permute.xlu0 %457 }
 0x19e   :  { %2475 = vmatpush3.xpose.msk.msra.mxu1 %vm505_vm2, %v458_v54  ;;  %2480 = vmatpush3.xpose.msk.msra.mxu0 %vm505_vm2, %v464_v53 }
 0x19f   :  { %2481 = vmatprep.subr.mxu0 %v2774_v17  ;;  %2483 = vmatprep.mubr.msk.f32.mxu0 %vm2775_vm1, %v2774_v17 }
 0x1a0   :  { %2486 = vmatprep.subr.mxu1 %v2774_v17 }
 0x1a1   :  { %v462_v56 = vpop.permute.xlu1 %461  ;;  %v434_v57 = vpop.permute.xlu0 %433 }
 0x1a2   :  { %2477 = vmatmul.mubr.msk.f32.vlgmr.msra.gmra.mxu1 %vm505_vm2, %v434_v57  ;;  %2482 = vmatpush3.xpose.msk.msra.mxu0 %vm505_vm2, %v462_v56 }
 0x1a3   :  { %2487 = vmatpush3.msra.mxu1 %v408_v55  ;;  %2500 = vmatprep.subr.mxu0 %v2774_v17 }
 0x1a4   :  { %2488 = vmatprep.subr.mxu1 %v2774_v17  ;;  %2490 = vmatprep.mubr.msk.f32.mxu1 %vm2775_vm1, %v2774_v17 }
 0x1a5   :  { %v436_v59 = vpop.permute.xlu1 %435  ;;  %2489 = vmatpush3.msra.mxu1 %v3047_v58 }
 0x1a6   :  { %2484 = vmatmul.mubr.msk.f32.vlgmr.msra.gmra.mxu0 %vm505_vm2, %v436_v59  ;;  %2493 = vmatprep.subr.mxu1 %v2774_v17 }
 0x1a7   :  { %2504 = vmatprep.mubr.msk.f32.mxu0 %vm2775_vm1, %v2774_v17 }
 0x1da   :  { %v578_v61 = vpop.f32.mrf.mxu1 }
 0x1db   :  { %v1115_v62 = vsel %vm1114_vm3, %v578_v61, -inf }
 0x1dc   :  { %1116 = vmax.xlane.f32.xlu0 %v1115_v62  ;;  %v2436_v63 = vpop.f32.mrf.mxu1 }
 0x1dd   :  { %v654_v0 = vpop.f32.mrf.mxu0 }
 0x1de   :  { %v1118_v1 = vsel %vm1114_vm3, %v654_v0, -inf }
 0x1df   :  { %v2443_v3 = vpop.f32.mrf.mxu0  ;;  %1119 = vmax.xlane.f32.xlu1 %v1118_v1 }
 0x24d   :  { %v730_v4 = vpop.f32.mrf.mxu1 }
 0x24e   :  { %v1121_v5 = vsel %vm1114_vm3, %v730_v4, -inf }
 0x24f   :  { %1122 = vmax.xlane.f32.xlu0 %v1121_v5  ;;  %v2450_v7 = vpop.f32.mrf.mxu1 }
 0x255   :  { %v806_v8 = vpop.f32.mrf.mxu0 }
 0x256   :  { %v882_v9 = vpop.f32.mrf.mxu1  ;;  %v1124_v10 = vsel %vm1114_vm3, %v806_v8, -inf }
 0x257   :  { %v2457_v11 = vpop.f32.mrf.mxu0  ;;  %1125 = vmax.xlane.f32.xlu0 %v1124_v10  ;;  %v1127_v12 = vsel %vm1114_vm3, %v882_v9, -inf }
 0x258   :  { %1128 = vmax.xlane.f32.xlu1 %v1127_v12  ;;  %v2464_v13 = vpop.f32.mrf.mxu1 }
 0x25d   :  { %v958_v14 = vpop.f32.mrf.mxu0 }
 0x25e   :  { %v1130_v15 = vsel %vm1114_vm3, %v958_v14, -inf }
 0x25f   :  { %v2471_v16 = vpop.f32.mrf.mxu0  ;;  %1131 = vmax.xlane.f32.xlu0 %v1130_v15 }
 0x262   :  { %v1034_v18 = vpop.f32.mrf.mxu1 }
 0x263   :  { %v1133_v19 = vsel %vm1114_vm3, %v1034_v18, -inf }
 0x264   :  { %1134 = vmax.xlane.f32.xlu1 %v1133_v19  ;;  %v2478_v20 = vpop.f32.mrf.mxu1 }
 0x265   :  { %v1117_v27 = vpop.xlane.xlu0 %1116 }
 0x266   :  { %v1110_v21 = vpop.f32.mrf.mxu0  ;;  %v1139_v28 = vsub.f32 %v578_v61, %v1117_v27 }
 0x267   :  { %v1136_v22 = vsel %vm1114_vm3, %v1110_v21, -inf }
 0x268   :  { %v2485_v23 = vpop.f32.mrf.mxu0  ;;  %1137 = vmax.xlane.f32.xlu0 %v1136_v22  ;;  %v1120_v25 = vpop.xlane.xlu1 %1119  ;;  %v1147_v30 = vmul.f32 1.442695, %v1139_v28 }
 0x269   :  { %v1140_v26 = vsub.f32 %v654_v0, %v1120_v25 }
 0x26b   :  { %v1149_v29 = vmul.f32 1.442695, %v1140_v26 }
 0x26d   :  { %2598 = vpow2.f32 %v1149_v29 }
 0x26e   :  { %2600 = vpow2.f32 %v1147_v30 }
 0x275   :  { %471 = vrot.lane.b32.xlu1 %v408_v55, %s2776_s24 }
 0x279   :  { %469 = vrot.lane.b32.xlu1 %v3047_v58, %s2776_s24 }
 0x27a   :  { %v3088_v31 = vpop.eup %2598 }
 0x27b   :  { %v1166_v32 = vsel %vm1114_vm3, %v3088_v31, 0.0  ;;  %v3092_v33 = vpop.eup %2600 }
 0x27c   :  { %v1163_v34 = vsel %vm1114_vm3, %v3092_v33, 0.0 }
 0x27d   :  { %473 = vrot.lane.b32.xlu1 %v3072_v24, %s2776_s24 }
 0x27e   :  { %475 = vrot.lane.b32.xlu0 %v3009_v39, %s2776_s24 }
 0x281   :  { %487 = vrot.lane.b32.xlu1 %v3009_v39, %s2777_s8 }
 0x282   :  { %483 = vrot.lane.b32.xlu0 %v408_v55, %s2777_s8 }
 0x285   :  { %485 = vrot.lane.b32.xlu1 %v3072_v24, %s2777_s8 }
 0x286   :  { %481 = vrot.lane.b32.xlu0 %v3047_v58, %s2777_s8 }
 0x289   :  { %499 = vrot.lane.b32.xlu1 %v3009_v39, %s2778_s5 }
 0x28a   :  { %495 = vrot.lane.b32.xlu0 %v408_v55, %s2778_s5 }
 0x2a9   :  { %1167 = vadd.xlane.f32.xlu0 %v1166_v32 }
 0x2ad   :  { %1164 = vadd.xlane.f32.xlu1 %v1163_v34 }
 0x2d8   :  { %v1123_v35 = vpop.xlane.xlu0 %1122 }
 0x2d9   :  { %v1141_v36 = vsub.f32 %v730_v4, %v1123_v35 }
 0x2db   :  { %v1151_v37 = vmul.f32 1.442695, %v1141_v36 }
 0x2dd   :  { %2602 = vpow2.f32 %v1151_v37 }
 0x2e0   :  { %v1126_v38 = vpop.xlane.xlu0 %1125 }
 0x2e1   :  { %v1142_v40 = vsub.f32 %v806_v8, %v1126_v38  ;;  %v1129_v41 = vpop.xlane.xlu1 %1128 }
 0x2e2   :  { %v1143_v42 = vsub.f32 %v882_v9, %v1129_v41 }
 0x2e3   :  { %v1153_v43 = vmul.f32 1.442695, %v1142_v40 }
 0x2e4   :  { %v1155_v44 = vmul.f32 1.442695, %v1143_v42 }
 0x2e5   :  { %2604 = vpow2.f32 %v1153_v43 }
 0x2e6   :  { %2606 = vpow2.f32 %v1155_v44 }
 0x2e8   :  { %v1132_v45 = vpop.xlane.xlu0 %1131 }
 0x2e9   :  { %v1144_v46 = vsub.f32 %v958_v14, %v1132_v45 }
 0x2ea   :  { %v3096_v47 = vpop.eup %2602 }
 0x2eb   :  { %v1157_v48 = vmul.f32 1.442695, %v1144_v46  ;;  %v1169_v49 = vsel %vm1114_vm3, %v3096_v47, 0.0 }
 0x2ec   :  { %1170 = vadd.xlane.f32.xlu1 %v1169_v49 }
 0x2ed   :  { %2608 = vpow2.f32 %v1157_v48  ;;  %v1135_v50 = vpop.xlane.xlu1 %1134 }
 0x2ee   :  { %v1145_v51 = vsub.f32 %v1034_v18, %v1135_v50 }
 0x2f0   :  { %v1159_v52 = vmul.f32 1.442695, %v1145_v51 }
 0x2f1   :  { %v1138_v53 = vpop.xlane.xlu0 %1137  ;;  %v472_v54 = vpop.permute.xlu1 %471 }
 0x2f2   :  { %v3100_v55 = vpop.eup %2604  ;;  %2610 = vpow2.f32 %v1159_v52  ;;  %v1146_v56 = vsub.f32 %v1110_v21, %v1138_v53  ;;  %2501 = vmatpush3.msra.mxu0 %v472_v54  ;;  %v1831_v54 = vld [vmem:[#allocation7 + $0x18] sm:$0xff] }
 0x2f3   :  { %v3102_v57 = vpop.eup %2606  ;;  %v1172_v59 = vsel %vm1114_vm3, %v3100_v55, 0.0  ;;  %2502 = vmatprep.subr.mxu0 %v2774_v17 }
 0x2f4   :  { %v1161_v60 = vmul.f32 1.442695, %v1146_v56  ;;  %1173 = vadd.xlane.f32.xlu0 %v1172_v59  ;;  %v1175_v61 = vsel %vm1114_vm3, %v3102_v57, 0.0  ;;  %v1829_v59 = vld [vmem:[#allocation7 + $0x8] sm:$0xff] }
 0x2f5   :  { %1176 = vadd.xlane.f32.xlu1 %v1175_v61  ;;  %v470_v62 = vpop.permute.xlu1 %469  ;;  %v476_v7 = vpop.permute.xlu0 %475  ;;  %v1828_v61 = vld [vmem:[#allocation7] sm:$0xff] }
 0x2f6   :  { %2612 = vpow2.f32 %v1161_v60  ;;  %2503 = vmatpush3.msra.mxu0 %v470_v62 }
 0x2f7   :  { %2514 = vmatprep.subr.mxu0 %v2774_v17 }
 0x2f9   :  { %v474_v8 = vpop.permute.xlu1 %473  ;;  %v484_v9 = vpop.permute.xlu0 %483 }
 0x2fa   :  { %v3110_v63 = vpop.eup %2608 }
 0x2fb   :  { %v1178_v0 = vsel %vm1114_vm3, %v3110_v63, 0.0 }
 0x2fc   :  { %1179 = vadd.xlane.f32.xlu0 %v1178_v0 }
 0x2fd   :  { %v488_v10 = vpop.permute.xlu1 %487  ;;  %v482_v11 = vpop.permute.xlu0 %481 }
 0x2ff   :  { %v3114_v1 = vpop.eup %2610 }
 0x300   :  { %v1181_v3 = vsel %vm1114_vm3, %v3114_v1, 0.0 }
 0x301   :  { %1182 = vadd.xlane.f32.xlu1 %v1181_v3  ;;  %v486_v12 = vpop.permute.xlu1 %485  ;;  %v496_v13 = vpop.permute.xlu0 %495 }
 0x303   :  { %v3118_v4 = vpop.eup %2612 }
 0x304   :  { %v1184_v5 = vsel %vm1114_vm3, %v3118_v4, 0.0 }
 0x305   :  { %1185 = vadd.xlane.f32.xlu0 %v1184_v5  ;;  %v500_v14 = vpop.permute.xlu1 %499 }
 0x312   :  { %497 = vrot.lane.b32.xlu1 %v3072_v24, %s2778_s5 }
 0x31b   :  { %493 = vrot.lane.b32.xlu0 %v3047_v58, %s2778_s5 }
 0x332   :  { %v1168_v15 = vpop.xlane.xlu0 %1167 }
 0x336   :  { %v1165_v16 = vpop.xlane.xlu1 %1164 }
 0x337   :  { %2614 = vrcp.f32 %v1165_v16 }
 0x338   :  { %2616 = vrcp.f32 %v1168_v15 }
 0x344   :  { %v2615_v18 = vpop.eup %2614 }
 0x345   :  { %v1195_v19 = vmul.f32 %v2615_v18, %v3092_v33  ;;  %v2617_v20 = vpop.eup %2616 }
 0x346   :  { %v1196_v58 = vmul.f32 %v2617_v20, %v3088_v31  ;;  %v2286_v20 = vld [vmem:[%s3256_s9] ss:$0 sm:$0xff] }
 0x347   :  { %2491 = vmatmul.mubr.msk.f32.vlgmr.msra.gmra.mxu1 %vm1114_vm3, %v1195_v19 }
 0x348   :  { %2494 = vmatpush3.msra.mxu1 %v3009_v39  ;;  %2497 = vmatprep.mubr.msk.f32.mxu1 %vm2775_vm1, %v2774_v17 }
 0x349   :  { %2495 = vmatprep.subr.mxu1 %v2774_v17 }
 0x34a   :  { %2496 = vmatpush3.msra.mxu1 %v3072_v24 }
 0x34b   :  { %2507 = vmatprep.subr.mxu1 %v2774_v17  ;;  %2498 = vmatmul.mubr.msk.f32.vlgmr.msra.gmra.mxu1 %vm1114_vm3, %v1196_v58 }
 0x34c   :  { %2508 = vmatpush3.msra.mxu1 %v476_v7  ;;  %2511 = vmatprep.mubr.msk.f32.mxu1 %vm2775_vm1, %v2774_v17 }
 0x34d   :  { %2509 = vmatprep.subr.mxu1 %v2774_v17 }
 0x34e   :  { %2510 = vmatpush3.msra.mxu1 %v474_v8 }
 0x34f   :  { %2521 = vmatprep.subr.mxu1 %v2774_v17 }
 0x375   :  { %v1171_v39 = vpop.xlane.xlu1 %1170 }
 0x376   :  { %2618 = vrcp.f32 %v1171_v39 }
 0x37d   :  { %v1174_v21 = vpop.xlane.xlu0 %1173 }
 0x37e   :  { %2620 = vrcp.f32 %v1174_v21  ;;  %v1177_v22 = vpop.xlane.xlu1 %1176 }
 0x37f   :  { %2622 = vrcp.f32 %v1177_v22 }
 0x383   :  { %v2619_v23 = vpop.eup %2618 }
 0x384   :  { %v1197_v24 = vmul.f32 %v2619_v23, %v3096_v47 }
 0x385   :  { %v1180_v25 = vpop.xlane.xlu0 %1179 }
 0x386   :  { %2624 = vrcp.f32 %v1180_v25  ;;  %2505 = vmatmul.mubr.msk.f32.vlgmr.msra.gmra.mxu0 %vm1114_vm3, %v1197_v24  ;;  %v1203_v35 = vadd.f32 %v1197_v24, %v1195_v19 }
 0x387   :  { %2515 = vmatpush3.msra.mxu0 %v484_v9  ;;  %2518 = vmatprep.mubr.msk.f32.mxu0 %vm2775_vm1, %v2774_v17 }
 0x388   :  { %2516 = vmatprep.subr.mxu0 %v2774_v17 }
 0x389   :  { %2517 = vmatpush3.msra.mxu0 %v482_v11 }
 0x38a   :  { %v1183_v26 = vpop.xlane.xlu1 %1182  ;;  %2528 = vmatprep.subr.mxu0 %v2774_v17 }
 0x38b   :  { %v2621_v27 = vpop.eup %2620  ;;  %2626 = vrcp.f32 %v1183_v26 }
 0x38c   :  { %v2623_v28 = vpop.eup %2622  ;;  %v1198_v29 = vmul.f32 %v2621_v27, %v3100_v55  ;;  %v1830_v55 = vld [vmem:[#allocation7 + $0x10] sm:$0xff] }
 0x38d   :  { %v1199_v30 = vmul.f32 %v2623_v28, %v3102_v57 }
 0x38e   :  { %v1186_v31 = vpop.xlane.xlu0 %1185  ;;  %2512 = vmatmul.mubr.msk.f32.vlgmr.msra.gmra.mxu1 %vm1114_vm3, %v1198_v29  ;;  %v498_v37 = vpop.permute.xlu1 %497  ;;  %v1204_v41 = vadd.f32 %v1198_v29, %v1196_v58 }
 0x38f   :  { %2628 = vrcp.f32 %v1186_v31  ;;  %2522 = vmatpush3.msra.mxu1 %v488_v10  ;;  %2519 = vmatmul.mubr.msk.f32.vlgmr.msra.gmra.mxu0 %vm1114_vm3, %v1199_v30  ;;  %v1205_v40 = vadd.f32 %v1203_v35, %v1199_v30 }
 0x390   :  { %2523 = vmatprep.subr.mxu1 %v2774_v17  ;;  %2529 = vmatpush3.msra.mxu0 %v496_v13 }
 0x391   :  { %2524 = vmatpush3.msra.mxu1 %v486_v12  ;;  %2530 = vmatprep.subr.mxu0 %v2774_v17 }
 0x392   :  { %v494_v32 = vpop.permute.xlu0 %493  ;;  %2525 = vmatprep.mubr.msk.f32.mxu1 %vm2775_vm1, %v2774_v17  ;;  %2535 = vmatprep.subr.mxu1 %v2774_v17 }
 0x393   :  { %v2625_v33 = vpop.eup %2624  ;;  %2531 = vmatpush3.msra.mxu0 %v494_v32  ;;  %2532 = vmatprep.mubr.msk.f32.mxu0 %vm2775_vm1, %v2774_v17 }
 0x394   :  { %v1200_v34 = vmul.f32 %v2625_v33, %v3110_v63  ;;  %2542 = vmatprep.subr.mxu0 %v1831_v54 }
 0x396   :  { %2526 = vmatmul.mubr.msk.f32.vlgmr.msra.gmra.mxu1 %vm1114_vm3, %v1200_v34  ;;  %v1206_v45 = vadd.f32 %v1204_v41, %v1200_v34  ;;  %v2067_v41 = vld [vmem:[%s3259_s12 + $0x30] sm:$0xff] }
 0x397   :  { %2536 = vmatpush3.msra.mxu1 %v500_v14  ;;  %2539 = vmatprep.mubr.msk.f32.mxu1 %vm2775_vm1, %v2774_v17 }
 0x398   :  { %v2627_v36 = vpop.eup %2626  ;;  %2537 = vmatprep.subr.mxu1 %v2774_v17 }
 0x399   :  { %2538 = vmatpush3.msra.mxu1 %v498_v37  ;;  %v1201_v38 = vmul.f32 %v2627_v36, %v3114_v1  ;;  %v1970_v36 = vld [vmem:[#allocation8 + $0x18] sm:$0xff]  ;;  %v1968_v37 = vld [vmem:[#allocation8 + $0x8] sm:$0xff] }
 0x39a   :  { %2553 = vmatprep.subr.mxu1 %v1970_v36 }
 0x39b   :  { %2533 = vmatmul.mubr.msk.f32.vlgmr.msra.gmra.mxu0 %vm1114_vm3, %v1201_v38  ;;  %v1207_v42 = vadd.f32 %v1205_v40, %v1201_v38  ;;  %v1967_v38 = vld [vmem:[#allocation8] sm:$0xff]  ;;  %v2068_v40 = vld [vmem:[%s3259_s12 + $0x38] sm:$0xff] }
 0x39c   :  { %v2629_v43 = vpop.eup %2628  ;;  %2543 = vmatpush3.msra.mxu0 %v1831_v54 }
 0x39d   :  { %v1202_v44 = vmul.f32 %v2629_v43, %v3118_v4  ;;  %v1209_v46 = vmul.f32 0.25, %v1207_v42  ;;  %2544 = vmatprep.subr.mxu0 %v1830_v55  ;;  %v2066_v42 = vld [vmem:[%s3259_s12 + $0x28] sm:$0xff]  ;;  %v2065_v43 = vld [vmem:[%s3259_s12 + $0x20] sm:$0xff] }
 0x39e   :  { %2545 = vmatpush3.msra.mxu0 %v1830_v55 }
 0x39f   :  { %2540 = vmatmul.mubr.msk.f32.vlgmr.msra.gmra.mxu1 %vm1114_vm3, %v1202_v44  ;;  %v1208_v47 = vadd.f32 %v1206_v45, %v1202_v44  ;;  %1211 = vst.msk [vmem:[#allocation11] sm:$0xff] %vm1114_vm3, %v1209_v46  ;;  %2546 = vmatprep.subr.mxu0 %v1829_v59 }
 0x3a0   :  { %2547 = vmatpush3.msra.mxu0 %v1829_v59  ;;  %2554 = vmatpush3.msra.mxu1 %v1970_v36 }
 0x3a1   :  { %v1210_v48 = vmul.f32 0.25, %v1208_v47  ;;  %2548 = vmatprep.subr.mxu0 %v1828_v61 }
 0x3a2   :  { %2549 = vmatpush3.msra.mxu0 %v1828_v61  ;;  %v2063_v61 = vld [vmem:[%s3259_s12 + $0x10] sm:$0xff] }
 0x3a3   :  { %1212 = vst.msk [vmem:[#allocation11 + $0x8] sm:$0xff] %vm1114_vm3, %v1210_v48  ;;  %2564 = vmatprep.subr.mxu0 %v2068_v40 }
 0x407   :  { %v1282_v17 = vpop.f32.mrf.mxu1 }
 0x409   :  { %v2492_v49 = vpop.f32.mrf.mxu1 }
 0x40b   :  { %v1355_v50 = vpop.f32.mrf.mxu1 }
 0x40d   :  { %v2499_v51 = vpop.f32.mrf.mxu1 }
 0x446   :  { %v1428_v52 = vpop.f32.mrf.mxu0 }
 0x447   :  { %1799 = vrot.lane.b32.xlu0 %v1428_v52, %s2771_s2  ;;  %v2290_v52 = vld [vmem:[%s3262_s15] ss:$0 sm:$0xff] }
 0x448   :  { %v2506_v53 = vpop.f32.mrf.mxu0 }
 0x44e   :  { %v1501_v56 = vpop.f32.mrf.mxu1 }
 0x44f   :  { %v1574_v57 = vpop.f32.mrf.mxu0  ;;  %1801 = vrot.lane.b32.xlu1 %v1501_v56, %s2771_s2 }
 0x450   :  { %1807 = vrot.lane.b32.xlu0 %v1574_v57, %s2779_s7  ;;  %v2513_v60 = vpop.f32.mrf.mxu1 }
 0x451   :  { %v2520_v62 = vpop.f32.mrf.mxu0  ;;  %v2064_v60 = vld [vmem:[%s3259_s12 + $0x18] sm:$0xff] }
 0x452   :  { %v2062_v62 = vld [vmem:[%s3259_s12 + $0x8] sm:$0xff] }
 0x456   :  { %v1647_v63 = vpop.f32.mrf.mxu1 }
 0x457   :  { %1809 = vrot.lane.b32.xlu1 %v1647_v63, %s2779_s7  ;;  %v2061_v63 = vld [vmem:[%s3259_s12] sm:$0xff] }
 0x458   :  { %v2527_v0 = vpop.f32.mrf.mxu1 }
 0x459   :  { %v2291_v0 = vld [vmem:[%s3258_s11] ss:$0 sm:$0xff]  ;;  %s2781_s11 = smov [#allocation11]  }
 0x45a   :  { %s2223_s12 = sshll.u32 %s2781_s11, 4  ;;  %s2224_s12 = int_to_ptr.vmem [resolvable:$true] %s2223_s12 }
 0x45b   :  { %v1720_v1 = vpop.f32.mrf.mxu0  ;;  %p2723_p7 = scmp.lt.s32.totalorder %s2224_s12, %s2224_s12 }
 0x45c   :  { %1815 = vrot.lane.b32.xlu0 %v1720_v1, %s2780_s3 }
 0x45d   :  { %v2534_v3 = vpop.f32.mrf.mxu0 }
 0x45f   :  { %v1793_v4 = vpop.f32.mrf.mxu1 }
 0x460   :  { %1817 = vrot.lane.b32.xlu1 %v1793_v4, %s2780_s3 }
 0x461   :  { %v2541_v5 = vpop.f32.mrf.mxu1 }
 0x4b9   :  { %v1800_v7 = vpop.permute.xlu0 %1799 }
 0x4ba   :  { %v1821_v10 = vsel %vm505_vm2, %v1282_v17, %v1800_v7 }
 0x4c1   :  { %v1802_v8 = vpop.permute.xlu1 %1801 }
 0x4c2   :  { %v1808_v9 = vpop.permute.xlu0 %1807  ;;  %v1822_v15 = vsel %vm505_vm2, %v1355_v50, %v1802_v8  ;;  %v2289_v50 = vld [vmem:[%s3261_s14] ss:$0 sm:$0xff] }
 0x4c3   :  { %v1823_v11 = vsel %vm1114_vm3, %v1821_v10, %v1808_v9  ;;  %v2294_v9 = vld [vmem:[%s3260_s13] ss:$0 sm:$0xff]  ;;  %s2718_s13 = scalar_lea.vmem %s2224_s12, 256 }
 0x4c4   :  { %p2719_p6 = scmp.ne.s32.totalorder %s2224_s12, %s2718_s13  ;;  %p2724_p8 = scmp.lt.s32.totalorder %s2718_s13, %s2718_s13 }
 0x4c6   :  { %p2725_p9 = por %p2724_p8, %p2723_p7 }
 0x4c8   :  { %p2726_p10 = pnand %p2725_p9, %p2719_p6 }
 0x4c9   :  { %v1810_v12 = vpop.permute.xlu1 %1809 }
 0x4ca   :  { %v1824_v16 = vsel %vm1114_vm3, %v1822_v15, %v1810_v12 }
 0x4ce   :  { %v1816_v13 = vpop.permute.xlu0 %1815 }
 0x4cf   :  { %v1826_v14 = vsel %vm1825_vm4, %v1823_v11, %v1816_v13 }
 0x4d0   :  { %2550 = vmatprep.mubr.msk.f32.mxu0 %vm135_vm0, %v1826_v14 }
 0x4d2   :  { %v1818_v18 = vpop.permute.xlu1 %1817 }
 0x4d3   :  { %v1827_v19 = vsel %vm1825_vm4, %v1824_v16, %v1818_v18 }
 0x4d4   :  { %2551 = vmatmul.mubr.msk.f32.vlgmr.msra.gmra.mxu0 %vm135_vm0, %v1827_v19 }
 0x4d5   :  { %2565 = vmatpush3.msra.mxu0 %v2068_v40 }
 0x4d6   :  { %2566 = vmatprep.subr.mxu0 %v2067_v41 }
 0x4d7   :  { %2567 = vmatpush3.msra.mxu0 %v2067_v41 }
 0x4d8   :  { %2568 = vmatprep.subr.mxu0 %v2066_v42 }
 0x4d9   :  { %2569 = vmatpush3.msra.mxu0 %v2066_v42 }
 0x4da   :  { %2570 = vmatprep.subr.mxu0 %v2065_v43 }
 0x4db   :  { %2571 = vmatpush3.msra.mxu0 %v2065_v43 }
 0x4dc   :  { %2572 = vmatprep.subr.mxu0 %v2064_v60 }
 0x4dd   :  { %2573 = vmatpush3.msra.mxu0 %v2064_v60 }
 0x4de   :  { %2574 = vmatprep.subr.mxu0 %v2063_v61 }
 0x4df   :  { %2575 = vmatpush3.msra.mxu0 %v2063_v61 }
 0x4e0   :  { %2576 = vmatprep.subr.mxu0 %v2062_v62 }
 0x4e1   :  { %2577 = vmatpush3.msra.mxu0 %v2062_v62 }
 0x4e2   :  { %2578 = vmatprep.subr.mxu0 %v2061_v63 }
 0x4e3   :  { %2579 = vmatpush3.msra.mxu0 %v2061_v63 }
 0x594   :  { %v2552_v58 = vpop.f32.mrf.mxu0 }
 0x595   :  { %v1917_v39 = vadd.f32 %v2552_v58, %v2286_v20 }
 0x596   :  { %v1911_v21 = vpop.f32.mrf.mxu0 }
 0x597   :  { %v1912_v22 = vadd.f32 %v2286_v20, %v1911_v21  ;;  %v1921_v23 = vadd.f32 %v1917_v39, %v2927_v6 }
 0x599   :  { %v1925_v24 = vsel %vm135_vm0, %v1921_v23, 0.0  ;;  %v1920_v25 = vadd.f32 %v1912_v22, %v2913_v2  ;;  %v1969_v2 = vld [vmem:[#allocation8 + $0x10] sm:$0xff] }
 0x59a   :  { %1926 = vadd.xlane.f32.xlu1 %v1925_v24  ;;  %2555 = vmatprep.subr.mxu1 %v1969_v2 }
 0x59b   :  { %v1922_v26 = vsel %vm135_vm0, %v1920_v25, 0.0  ;;  %2556 = vmatpush3.msra.mxu1 %v1969_v2 }
 0x59c   :  { %1923 = vadd.xlane.f32.xlu0 %v1922_v26  ;;  %2557 = vmatprep.subr.mxu1 %v1968_v37 }
 0x59d   :  { %2558 = vmatpush3.msra.mxu1 %v1968_v37 }
 0x59e   :  { %2559 = vmatprep.subr.mxu1 %v1967_v38 }
 0x59f   :  { %2560 = vmatpush3.msra.mxu1 %v1967_v38 }
 0x623   :  { %v1927_v27 = vpop.xlane.xlu1 %1926 }
 0x624   :  { %v1930_v28 = vmul.f32 0.03125, %v1927_v27 }
 0x625   :  { %v1924_v29 = vpop.xlane.xlu0 %1923 }
 0x626   :  { %v1929_v30 = vmul.f32 0.03125, %v1924_v29  ;;  %v1932_v31 = vsub.f32 %v1921_v23, %v1930_v28 }
 0x628   :  { %v1931_v32 = vsub.f32 %v1920_v25, %v1929_v30  ;;  %v1934_v35 = vmul.f32 %v1932_v31, %v1932_v31 }
 0x62a   :  { %v1933_v33 = vmul.f32 %v1931_v32, %v1931_v32  ;;  %v1938_v6 = vsel %vm135_vm0, %v1934_v35, 0.0 }
 0x62c   :  { %v1935_v34 = vsel %vm135_vm0, %v1933_v33, 0.0 }
 0x62d   :  { %1936 = vadd.xlane.f32.xlu0 %v1935_v34 }
 0x631   :  { %1939 = vadd.xlane.f32.xlu0 %v1938_v6 }
 0x6b6   :  { %v1937_v44 = vpop.xlane.xlu0 %1936 }
 0x6b7   :  { %v1941_v45 = vmul.f32 0.03125, %v1937_v44 }
 0x6b9   :  { %v1943_v46 = vadd.f32 1e-05, %v1941_v45 }
 0x6ba   :  { %v1940_v47 = vpop.xlane.xlu0 %1939 }
 0x6bb   :  { %2630 = vrsqrt.f32 %v1943_v46  ;;  %v1942_v48 = vmul.f32 0.03125, %v1940_v47 }
 0x6bd   :  { %v1944_v17 = vadd.f32 1e-05, %v1942_v48 }
 0x6bf   :  { %2632 = vrsqrt.f32 %v1944_v17 }
 0x6c8   :  { %v2631_v49 = vpop.eup %2630 }
 0x6c9   :  { %v1947_v51 = vmul.f32 %v2631_v49, %v1931_v32 }
 0x6cb   :  { %v1956_v53 = vmul.f32 %v2289_v50, %v1947_v51 }
 0x6cc   :  { %v2633_v54 = vpop.eup %2632 }
 0x6cd   :  { %v1948_v55 = vmul.f32 %v2633_v54, %v1932_v31  ;;  %v1965_v56 = vadd.f32 %v2290_v52, %v1956_v53 }
 0x6cf   :  { %v1957_v57 = vmul.f32 %v2289_v50, %v1948_v55  ;;  %2561 = vmatprep.mubr.msk.f32.mxu1 %vm135_vm0, %v1965_v56 }
 0x6d1   :  { %v1966_v59 = vadd.f32 %v2290_v52, %v1957_v57 }
 0x6d3   :  { %2562 = vmatmul.mubr.msk.f32.vlgmr.msra.gmra.mxu1 %vm135_vm0, %v1966_v59 }
 0x793   :  { %v2563_v1 = vpop.f32.mrf.mxu1 }
 0x794   :  { %v2056_v3 = vadd.f32 %v2563_v1, %v2291_v0 }
 0x795   :  { %v2050_v4 = vpop.f32.mrf.mxu1 }
 0x796   :  { %v2051_v5 = vadd.f32 %v2291_v0, %v2050_v4  ;;  %v2060_v8 = vmax.f32 %v2056_v3, 0.0 }
 0x798   :  { %v2059_v7 = vmax.f32 %v2051_v5, 0.0 }
 0x79a   :  { %2580 = vmatprep.mubr.msk.f32.mxu0 %vm2076_vm5, %v2059_v7 }
 0x79b   :  { %2581 = vmatmul.mubr.msk.f32.vlgmr.msra.gmra.mxu0 %vm2076_vm5, %v2060_v8 }
 0x85b   :  { %v2582_v10 = vpop.f32.mrf.mxu0 }
 0x85c   :  { %v2155_v11 = vadd.f32 %v2582_v10, %v2294_v9 }
 0x85d   :  { %v2149_v12 = vpop.f32.mrf.mxu0 }
 0x85e   :  { %v2150_v13 = vadd.f32 %v2294_v9, %v2149_v12  ;;  %v2159_v14 = vadd.f32 %v2155_v11, %v1966_v59 }
 0x860   :  { %v2163_v15 = vsel %vm135_vm0, %v2159_v14, 0.0  ;;  %v2158_v16 = vadd.f32 %v2150_v13, %v1965_v56 }
 0x861   :  { %2164 = vadd.xlane.f32.xlu0 %v2163_v15 }
 0x862   :  { %v2160_v18 = vsel %vm135_vm0, %v2158_v16, 0.0 }
 0x863   :  { %2161 = vadd.xlane.f32.xlu1 %v2160_v18 }
 0x8ea   :  { %v2165_v19 = vpop.xlane.xlu0 %2164 }
 0x8eb   :  { %v2167_v20 = vmul.f32 0.03125, %v2165_v19 }
 0x8ec   :  { %v2162_v58 = vpop.xlane.xlu1 %2161 }
 0x8ed   :  { %v2169_v39 = vsub.f32 %v2159_v14, %v2167_v20  ;;  %v2166_v21 = vmul.f32 0.03125, %v2162_v58 }
 0x8ef   :  { %v2168_v22 = vsub.f32 %v2158_v16, %v2166_v21  ;;  %v2171_v23 = vmul.f32 %v2169_v39, %v2169_v39 }
 0x8f1   :  { %v2175_v24 = vsel %vm135_vm0, %v2171_v23, 0.0  ;;  %v2170_v25 = vmul.f32 %v2168_v22, %v2168_v22 }
 0x8f2   :  { %2176 = vadd.xlane.f32.xlu0 %v2175_v24 }
 0x8f3   :  { %v2172_v26 = vsel %vm135_vm0, %v2170_v25, 0.0 }
 0x8f4   :  { %2173 = vadd.xlane.f32.xlu1 %v2172_v26 }
 0x8f5   :  { %2729 = shalt.err (!%p2726_p10)
}
 0x8f6   :  { %2229 = dma.vmem_to_hbm [thread:$0]  %s2224_s12, 256, %s3266_s19, [#allocation12], %s2770_s22, %s2770_s22, %s2771_s2  }
 0x8f7   :  { %v2297_v34 = vld [vmem:[%s3263_s16] ss:$0 sm:$0xff]  ;;  %s2782_s19 = smov [#allocation10]  }
 0x8f8   :  { %v2298_v36 = vld [vmem:[%s3264_s17] ss:$0 sm:$0xff]  ;;  %s2211_s1 = sshll.u32 %s2782_s19, 4  ;;  %s2212_s1 = int_to_ptr.vmem [resolvable:$true] %s2211_s1 }
 0x8f9   :  { %s2738_s21 = scalar_lea.vmem %s2212_s1, 256  ;;  %p2743_p12 = scmp.lt.s32.totalorder %s2212_s1, %s2212_s1 }
 0x8fa   :  { %p2739_p11 = scmp.ne.s32.totalorder %s2212_s1, %s2738_s21  ;;  %p2744_p13 = scmp.lt.s32.totalorder %s2738_s21, %s2738_s21 }
 0x8fc   :  { %p2745_p0 = por %p2744_p13, %p2743_p12 }
 0x8fe   :  { %p2746_p1 = pnand %p2745_p0, %p2739_p11 }
 0x97b   :  { %v2177_v27 = vpop.xlane.xlu0 %2176 }
 0x97c   :  { %v2179_v28 = vmul.f32 0.03125, %v2177_v27 }
 0x97d   :  { %v2174_v29 = vpop.xlane.xlu1 %2173 }
 0x97e   :  { %v2181_v30 = vadd.f32 1e-05, %v2179_v28  ;;  %v2178_v31 = vmul.f32 0.03125, %v2174_v29 }
 0x980   :  { %2634 = vrsqrt.f32 %v2181_v30  ;;  %v2180_v32 = vadd.f32 1e-05, %v2178_v31 }
 0x982   :  { %2636 = vrsqrt.f32 %v2180_v32 }
 0x98d   :  { %v2635_v33 = vpop.eup %2634 }
 0x98e   :  { %v2185_v35 = vmul.f32 %v2635_v33, %v2169_v39 }
 0x98f   :  { %v2637_v6 = vpop.eup %2636 }
 0x990   :  { %v2184_v2 = vmul.f32 %v2637_v6, %v2168_v22  ;;  %v2194_v37 = vmul.f32 %v2297_v34, %v2185_v35 }
 0x992   :  { %v2193_v38 = vmul.f32 %v2297_v34, %v2184_v2  ;;  %v2203_v40 = vadd.f32 %v2298_v36, %v2194_v37 }
 0x994   :  { %v2202_v41 = vadd.f32 %v2298_v36, %v2193_v38  ;;  %2205 = vst.msk [vmem:[#allocation10 + $0x8] sm:$0xff] %vm135_vm0, %v2203_v40 }
 0x996   :  { %2204 = vst.msk [vmem:[#allocation10] sm:$0xff] %vm135_vm0, %v2202_v41 }
 0x997   :  { %2749 = shalt.err (!%p2746_p1)
}
 0x998   :  { %2217 = dma.vmem_to_hbm [thread:$0]  %s2212_s1, 256, %s3265_s18, [#allocation4], %s2770_s22, %s2770_s22, %s2771_s2  }
 0x999   :  { %2764 = dma.done.wait [#allocation4], 256  }
 0x99a   :  { %2765 = vsyncadd [#allocation4], 4294967040 }
 0x99b   :  { %2766 = dma.done.wait [#allocation12], 256  }
 0x99c   :  { %2767 = vsyncadd [#allocation12], 4294967040 }
 0x99d   :  { %2236 = vsyncpa [#allocation3], 1 }
 0x99e   :  { %2237 = vsyncpa [#allocation6], 1 }
 0x99f   :  { %2238 = vsyncpa [#allocation9], 1 }
 0x9a0   :  { %2239 = vsyncpa [#allocation4], 1 }
 0x9a1   :  { %2240 = vsyncpa [#allocation12], 1 }

</bundles_post_ra>
